<compile_context>
chip_gen: v5e
topology: v5e:2x2
jax: 0.10.0
libtpu: 0.0.40
codegen_flags: <defaults>
</compile_context>

<pallas_src>
import jax
import jax.numpy as jnp
from jax.experimental import pallas as pl
from jax.experimental.pallas import tpu as pltpu

LANE = 128
SUBLANE = 8


def _round_up(x, m):
    return pl.cdiv(x, m) * m


def mlp_kernel(x_ref, w0_ref, b0_ref, w1_ref, b1_ref, w2_ref, b2_ref, o_ref):
    # Layer 0: Linear + ReLU (bf16 operands, f32 accumulation on the MXU)
    h = jnp.dot(x_ref[...], w0_ref[...], preferred_element_type=jnp.float32)
    h = jnp.maximum(h + b0_ref[...], 0.0)
    # Layer 1: Linear + ReLU
    h = jnp.dot(h.astype(jnp.bfloat16), w1_ref[...],
                preferred_element_type=jnp.float32)
    h = jnp.maximum(h + b1_ref[...], 0.0)
    # Layer 2: Linear (no activation); output lanes are padded to 128-multiple
    out = jnp.dot(h.astype(jnp.bfloat16), w2_ref[...],
                  preferred_element_type=jnp.float32)
    o_ref[...] = (out + b2_ref[...]).astype(o_ref.dtype)


def _choose_batch_tile(B):
    # Big tiles amortize the ~0.35us/step grid overhead.  Keep >= 2 grid steps
    # when the batch allows it so v7x (2 TCs) can shard the "parallel" axis;
    # the extra step is negligible on single-TC v5e/v6e.
    if B >= 512:
        return 256
    if B >= 2 * SUBLANE:
        return _round_up(pl.cdiv(B, 2), SUBLANE)
    return SUBLANE


def state_to_goal_forward(state, reward, params, *, batch_tile=None):
    """Pallas implementation of State_to_Goal_Approximation.forward.

    `reward` is accepted (to match the PyTorch signature) but unused, exactly
    like the reference module.
    """
    del reward  # unused in the reference forward pass
    w0, b0, w1, b1, w2, b2 = params
    B, state_dim = state.shape
    h0 = w0.shape[1]
    h1 = w1.shape[1]
    goal_dim = w2.shape[1]
    out_dtype = state.dtype

    if batch_tile is None:
        batch_tile = _choose_batch_tile(B)
    batch_tile = min(batch_tile, _round_up(B, SUBLANE))

    # Pad the batch so every tile is full (no masked tail stores) and pad the
    # final layer to a lane-dense (128-multiple) output width.
    Bp = _round_up(B, batch_tile)
    goal_pad = _round_up(goal_dim, LANE)

    x = state.astype(jnp.bfloat16)
    if Bp != B:
        x = jnp.pad(x, ((0, Bp - B), (0, 0)))

    # MXU is bf16-native: weights in bf16; biases stay f32 (cheap VPU add).
    w0b = w0.astype(jnp.bfloat16)
    w1b = w1.astype(jnp.bfloat16)
    w2b = jnp.pad(w2.astype(jnp.bfloat16), ((0, 0), (0, goal_pad - goal_dim)))
    b0f = b0.astype(jnp.float32)
    b1f = b1.astype(jnp.float32)
    b2f = jnp.pad(b2.astype(jnp.float32), ((0, 0), (0, goal_pad - goal_dim)))

    grid = (Bp // batch_tile,)
    full = lambda i: (0, 0)  # weights/biases: same full block every grid step

    out = pl.pallas_call(
        mlp_kernel,
        out_shape=jax.ShapeDtypeStruct((Bp, goal_pad), out_dtype),
        grid_spec=pltpu.PrefetchScalarGridSpec(
            num_scalar_prefetch=0,
            grid=grid,
            in_specs=[
                pl.BlockSpec((batch_tile, state_dim), lambda i: (i, 0)),
                pl.BlockSpec((state_dim, h0), full),
                pl.BlockSpec((1, h0), full),
                pl.BlockSpec((h0, h1), full),
                pl.BlockSpec((1, h1), full),
                pl.BlockSpec((h1, goal_pad), full),
                pl.BlockSpec((1, goal_pad), full),
            ],
            out_specs=pl.BlockSpec((batch_tile, goal_pad), lambda i: (i, 0)),
        ),
        compiler_params=pltpu.CompilerParams(
            dimension_semantics=("parallel",),
        ),
    )(x, w0b, b0f, w1b, b1f, w2b, b2f)

    return out[:B, :goal_dim]


def init_params(key, state_dim, goal_dim, hidden_units=(256, 256),
                dtype=jnp.float32):
    """Deterministic synthetic parameter init (PyTorch-Linear-like uniform)."""
    dims = [state_dim, *hidden_units, goal_dim]
    params = []
    for idx, (i_dim, o_dim) in enumerate(zip(dims[:-1], dims[1:])):
        kw, kb, key = jax.random.split(jax.random.fold_in(key, idx), 3)
        bound = 1.0 / (i_dim ** 0.5)
        # Store W as [in_dim, out_dim] (transpose of PyTorch's [out, in]).
        w = jax.random.uniform(kw, (i_dim, o_dim), dtype, -bound, bound)
        b = jax.random.uniform(kb, (1, o_dim), dtype, -bound, bound)
        params.extend([w, b])
    return tuple(params)


def reference_forward(state, params):
    """Plain-JAX reference using the same bf16-operand / f32-accum math."""
    w0, b0, w1, b1, w2, b2 = params
    xb = state.astype(jnp.bfloat16)
    h = jnp.dot(xb, w0.astype(jnp.bfloat16),
                preferred_element_type=jnp.float32) + b0
    h = jnp.maximum(h, 0.0)
    h = jnp.dot(h.astype(jnp.bfloat16), w1.astype(jnp.bfloat16),
                preferred_element_type=jnp.float32) + b1
    h = jnp.maximum(h, 0.0)
    return jnp.dot(h.astype(jnp.bfloat16), w2.astype(jnp.bfloat16),
                   preferred_element_type=jnp.float32) + b2


if __name__ == "__main__":
    key = jax.random.PRNGKey(0)
    k_state, k_reward, k_params = jax.random.split(key, 3)

    batch = 128
    state_dim = 16
    goal_dim = 8
    hidden_units = (256, 256)

    state = jax.random.normal(k_state, (batch, state_dim), jnp.float32)
    reward = jax.random.normal(k_reward, (batch, 1), jnp.float32)  # unused, as in torch
    params = init_params(k_params, state_dim, goal_dim, hidden_units)

    out = state_to_goal_forward(state, reward, params)
    out = jax.block_until_ready(out)

    ref = reference_forward(state, params)
    assert out.shape == (batch, goal_dim)
    assert jnp.allclose(out, ref, atol=2e-2, rtol=2e-2), "mismatch vs reference"

    print("KERNEL_OK")
</pallas_src>

<mosaic_0001>
module attributes {stable_mosaic.version = 11 : i64} {
  func.func @mlp_kernel(%arg0: i32, %arg1: memref<64x16xbf16, #tpu.memory_space<vmem>>, %arg2: memref<16x256xbf16, #tpu.memory_space<vmem>>, %arg3: memref<1x256xf32, #tpu.memory_space<vmem>>, %arg4: memref<256x256xbf16, #tpu.memory_space<vmem>>, %arg5: memref<1x256xf32, #tpu.memory_space<vmem>>, %arg6: memref<256x128xbf16, #tpu.memory_space<vmem>>, %arg7: memref<1x128xf32, #tpu.memory_space<vmem>>, %arg8: memref<64x128xf32, #tpu.memory_space<vmem>>) attributes {dimension_semantics = [#tpu.dimension_semantics<parallel>], iteration_bounds = array<i64: 2>, scalar_prefetch = 0 : i64, scratch_operands = 0 : i64, tpu.core_type = #tpu.core_type<tc>, window_params = [{transform_indices = @transform_0, window_bounds = array<i64: 64, 16>}, {pipeline_mode = #tpu.pipeline_mode<synchronous>, transform_indices = @transform_1, window_bounds = array<i64: 16, 256>}, {pipeline_mode = #tpu.pipeline_mode<synchronous>, transform_indices = @transform_2, window_bounds = array<i64: 1, 256>}, {pipeline_mode = #tpu.pipeline_mode<synchronous>, transform_indices = @transform_3, window_bounds = array<i64: 256, 256>}, {pipeline_mode = #tpu.pipeline_mode<synchronous>, transform_indices = @transform_4, window_bounds = array<i64: 1, 256>}, {pipeline_mode = #tpu.pipeline_mode<synchronous>, transform_indices = @transform_5, window_bounds = array<i64: 256, 128>}, {pipeline_mode = #tpu.pipeline_mode<synchronous>, transform_indices = @transform_6, window_bounds = array<i64: 1, 128>}, {transform_indices = @transform_7, window_bounds = array<i64: 64, 128>}]} {
    %c0 = arith.constant 0 : index
    %c0_0 = arith.constant 0 : index
    %0 = vector.load %arg1[%c0, %c0_0] : memref<64x16xbf16, #tpu.memory_space<vmem>>, vector<64x16xbf16>
    %c0_1 = arith.constant 0 : index
    %c0_2 = arith.constant 0 : index
    %1 = vector.load %arg2[%c0_1, %c0_2] : memref<16x256xbf16, #tpu.memory_space<vmem>>, vector<16x256xbf16>
    %cst = arith.constant dense<0.000000e+00> : vector<64x256xf32>
    %2 = tpu.matmul %0, %1, %cst {dimension_numbers = #tpu.dot_dimension_numbers<[1], [0], [0], [1], [0, 0, 1, 1], [], []>} : vector<64x16xbf16>, vector<16x256xbf16>, vector<64x256xf32> -> vector<64x256xf32>
    %c0_3 = arith.constant 0 : index
    %c0_4 = arith.constant 0 : index
    %3 = vector.load %arg3[%c0_3, %c0_4] : memref<1x256xf32, #tpu.memory_space<vmem>>, vector<1x256xf32>
    %4 = vector.broadcast %3 : vector<1x256xf32> to vector<64x256xf32>
    %5 = arith.addf %2, %4 : vector<64x256xf32>
    %cst_5 = arith.constant 0.000000e+00 : f32
    %6 = vector.broadcast %cst_5 : f32 to vector<64x256xf32>
    %7 = arith.maximumf %5, %6 : vector<64x256xf32>
    %8 = arith.truncf %7 : vector<64x256xf32> to vector<64x256xbf16>
    %c0_6 = arith.constant 0 : index
    %c0_7 = arith.constant 0 : index
    %9 = vector.load %arg4[%c0_6, %c0_7] : memref<256x256xbf16, #tpu.memory_space<vmem>>, vector<256x256xbf16>
    %cst_8 = arith.constant dense<0.000000e+00> : vector<64x256xf32>
    %10 = tpu.matmul %8, %9, %cst_8 {dimension_numbers = #tpu.dot_dimension_numbers<[1], [0], [0], [1], [0, 0, 1, 1], [], []>} : vector<64x256xbf16>, vector<256x256xbf16>, vector<64x256xf32> -> vector<64x256xf32>
    %c0_9 = arith.constant 0 : index
    %c0_10 = arith.constant 0 : index
    %11 = vector.load %arg5[%c0_9, %c0_10] : memref<1x256xf32, #tpu.memory_space<vmem>>, vector<1x256xf32>
    %12 = vector.broadcast %11 : vector<1x256xf32> to vector<64x256xf32>
    %13 = arith.addf %10, %12 : vector<64x256xf32>
    %cst_11 = arith.constant 0.000000e+00 : f32
    %14 = vector.broadcast %cst_11 : f32 to vector<64x256xf32>
    %15 = arith.maximumf %13, %14 : vector<64x256xf32>
    %16 = arith.truncf %15 : vector<64x256xf32> to vector<64x256xbf16>
    %c0_12 = arith.constant 0 : index
    %c0_13 = arith.constant 0 : index
    %17 = vector.load %arg6[%c0_12, %c0_13] : memref<256x128xbf16, #tpu.memory_space<vmem>>, vector<256x128xbf16>
    %cst_14 = arith.constant dense<0.000000e+00> : vector<64x128xf32>
    %18 = tpu.matmul %16, %17, %cst_14 {dimension_numbers = #tpu.dot_dimension_numbers<[1], [0], [0], [1], [0, 0, 1, 1], [], []>} : vector<64x256xbf16>, vector<256x128xbf16>, vector<64x128xf32> -> vector<64x128xf32>
    %c0_15 = arith.constant 0 : index
    %c0_16 = arith.constant 0 : index
    %19 = vector.load %arg7[%c0_15, %c0_16] : memref<1x128xf32, #tpu.memory_space<vmem>>, vector<1x128xf32>
    %20 = vector.broadcast %19 : vector<1x128xf32> to vector<64x128xf32>
    %21 = arith.addf %18, %20 : vector<64x128xf32>
    %c0_17 = arith.constant 0 : index
    %c0_18 = arith.constant 0 : index
    %22 = vector.load %arg8[%c0_17, %c0_18] : memref<64x128xf32, #tpu.memory_space<vmem>>, vector<64x128xf32>
    tpu.vector_store %arg8[%c0_17, %c0_18], %21 {strides = array<i32>} : memref<64x128xf32, #tpu.memory_space<vmem>>, vector<64x128xf32>,
    return
  }
  func.func @transform_0(%arg0: i32) -> (i32, i32) {
    %c0_i32 = arith.constant 0 : i32
    %c0_i32_0 = arith.constant 0 : i32
    return %arg0, %c0_i32 : i32, i32
  }
  func.func @transform_1(%arg0: i32) -> (i32, i32) {
    %c0_i32 = arith.constant 0 : i32
    %c0_i32_0 = arith.constant 0 : i32
    %c0_i32_1 = arith.constant 0 : i32
    return %c0_i32, %c0_i32_0 : i32, i32
  }
  func.func @transform_2(%arg0: i32) -> (i32, i32) {
    %c0_i32 = arith.constant 0 : i32
    %c0_i32_0 = arith.constant 0 : i32
    %c0_i32_1 = arith.constant 0 : i32
    return %c0_i32, %c0_i32_0 : i32, i32
  }
  func.func @transform_3(%arg0: i32) -> (i32, i32) {
    %c0_i32 = arith.constant 0 : i32
    %c0_i32_0 = arith.constant 0 : i32
    %c0_i32_1 = arith.constant 0 : i32
    return %c0_i32, %c0_i32_0 : i32, i32
  }
  func.func @transform_4(%arg0: i32) -> (i32, i32) {
    %c0_i32 = arith.constant 0 : i32
    %c0_i32_0 = arith.constant 0 : i32
    %c0_i32_1 = arith.constant 0 : i32
    return %c0_i32, %c0_i32_0 : i32, i32
  }
  func.func @transform_5(%arg0: i32) -> (i32, i32) {
    %c0_i32 = arith.constant 0 : i32
    %c0_i32_0 = arith.constant 0 : i32
    %c0_i32_1 = arith.constant 0 : i32
    return %c0_i32, %c0_i32_0 : i32, i32
  }
  func.func @transform_6(%arg0: i32) -> (i32, i32) {
    %c0_i32 = arith.constant 0 : i32
    %c0_i32_0 = arith.constant 0 : i32
    %c0_i32_1 = arith.constant 0 : i32
    return %c0_i32, %c0_i32_0 : i32, i32
  }
  func.func @transform_7(%arg0: i32) -> (i32, i32) {
    %c0_i32 = arith.constant 0 : i32
    %c0_i32_0 = arith.constant 0 : i32
    return %arg0, %c0_i32 : i32, i32
  }
}

</mosaic_0001>

<bundles_post_ra>
// kernel: tpu_custom_call.1
= control target key start
LH: loop header
LB: loop body
LE: loop exit
PB: predicated region body
PF: predicated region fallthrough
CT: control target
= control target key end

     0   :  { %12 = vsyncpa [#allocation3], 0  ;;  %s1833_s0 = inlined_call_operand.vmem [shape: bf16[128,16], index: 0, kind: input, shape index: {}]   ;;  %s1834_s1 = inlined_call_operand.vmem [shape: bf16[16,256], index: 1, kind: input, shape index: {}]   ;;  %s1835_s2 = inlined_call_operand.vmem [shape: f32[1,256], index: 2, kind: input, shape index: {}]   ;;  %s1836_s3 = inlined_call_operand.hbm [shape: bf16[256,256], index: 3, kind: input, shape index: {}]   ;;  %s1837_s4 = inlined_call_operand.vmem [shape: f32[1,256], index: 4, kind: input, shape index: {}]   ;;  %s1838_s5 = inlined_call_operand.hbm [shape: bf16[256,128], index: 5, kind: input, shape index: {}]   ;;  %s1839_s6 = inlined_call_operand.vmem [shape: f32[1,128], index: 6, kind: input, shape index: {}]   ;;  %s1840_s7 = inlined_call_operand.hbm [shape: f32[128,128], index: 7, kind: output, shape index: {}]  }
   0x1   :  { %13 = vsyncpa [#allocation6], 0 }
   0x2   :  { %14 = vsyncpa [#allocation4], 0 }
   0x3   :  { %16 = vsyncpa [#allocation4 + $0x1], 0  ;;  %s1634_s24 = smov 0   ;;  %s1636_s25 = smov 0  }
   0x4   :  { %s1638_s26 = smov 0   ;;  %s1640_s27 = smov 0  }
   0x5 LB: > { %s1655_s28 = sadd.s32 4294967295, %s1584_s27   ;;  %s1092_s29 = sadd.s32 4294967294, %s1584_s27   ;;  %s1584_s27 = sphi %s1640_s27, %s1847_s27   ;;  %s1580_s26 = sphi %s1638_s26, %s1846_s26   ;;  %s1576_s25 = sphi %s1636_s25, %s1845_s25   ;;  %s1572_s24 = sphi %s1634_s24, %s1844_s24  }
   0x6   : > { %s1659_s30 = sadd.s32 1, %s1584_s27   ;;  %s181_s8 = sadd.s32 1, %s1580_s26 }
   0x7   : > { %s178_s9 = ssub.s32 %s1584_s27, %s1659_s30  ;;  %p191_p0 = scmp.ne.s32.totalorder %s1580_s26, %s1576_s25 }
   0x8   : > { %p179_p1 = scmp.eq.s32.totalorder %s178_s9, 0  ;;  %p192_p2 = scmp.eq.s32.totalorder %s1655_s28, 1 }
   0x9   : > { %p197_p3 = scmp.ne.s32.totalorder %s1576_s25, %s1572_s24  ;;  %p198_p4 = scmp.eq.s32.totalorder %s1092_s29, 1 }
   0xa   : > { %s1670_s10 = scalar_select %p179_p1, %s1580_s26, %s181_s8  }
   0xb   : > { %p1672_p5 = por %p192_p2, %p191_p0  ;;  %p1676_p6 = por %p198_p4, %p197_p3 }
   0xc   : > { %p1093_p7 = scmp.ge.s32.totalorder %s1584_s27, 1  ;;  %p205_p8 = scmp.lt.s32.totalorder %s1584_s27, 3 }
   0xd   : > { %p1408_p9 = scmp.eq.s32.totalorder %s1655_s28, 0  ;;  %s222_s16 = sshll.u32 %s1836_s3, 4  ;;  %s223_s16 = int_to_ptr.hbm [resolvable:$true] %s222_s16 }
   0xe   : > { %p1683_p10 = pnand %p1093_p7, %p205_p8  ;;  %s1586_s17 = smov [#allocation2]  }
   0xf   : > { %s224_s18 = sshll.u32 %s1586_s17, 4  ;;  %s239_s21 = sshll.u32 %s1838_s5, 4  ;;  %s225_s18 = int_to_ptr.vmem [resolvable:$true] %s224_s18  ;;  %s240_s21 = int_to_ptr.hbm [resolvable:$true] %s239_s21 }
  0x10   : > { %p1397_p11 = pneg %p1683_p10  ;;  %s1587_s22 = smov 128  }
  0x11   : > { %s1588_s23 = smov 8   ;;  %s1589_s29 = smov [#allocation5]  }
  0x12   : > { %p1398_p12 = pnand %p1408_p9, %p1397_p11  ;;  %s241_s8 = sshll.u32 %s1589_s29, 4  ;;  %s242_s8 = int_to_ptr.vmem [resolvable:$true] %s241_s8 }
  0x13   : > { %s1590_s9 = smov 64   ;;  %s1591_s14 = smov 4  }
  0x14   : > { %1400 = dma.hbm_to_vmem [thread:$0]  (!%p1398_p12), %s223_s16, 4096, %s225_s18, [#allocation3], %s1587_s22, %s1587_s22, %s1588_s23  }
  0x15   : > { %1403 = dma.hbm_to_vmem [thread:$0]  (!%p1398_p12), %s240_s21, 2048, %s242_s8, [#allocation6], %s1590_s9, %s1590_s9, %s1591_s14  }
  0x16   : > { %269 = sbr.rel (%p1683_p10) target bundleno = 521 (0x209), region = 48 }
  0x1b   : > { %1559 = dma.done.wait (%p1408_p9), [#allocation3], 4096  }
  0x1c   : > { %1561 = vsyncadd (%p1408_p9), [#allocation3], 4294963200 }
  0x1d   : > { %1563 = dma.done.wait (%p1408_p9), [#allocation6], 2048  }
  0x1e   : > { %1565 = vsyncadd (%p1408_p9), [#allocation6], 4294965248  ;;  %s1101_s15 = sshll.u32 %s1655_s28, 3  ;;  %v1121_v0 = vld [vmem:[%s1834_s1] sm:$0xf]  ;;  %vm361_vm0 = vcmask 130048  }
  0x1f   : > { %p308_p13 = scmp.lt.s32.totalorder %s1101_s15, 15  ;;  %v1337_v1 = vld [vmem:[%s1834_s1 + $0x4] sm:$0xf0]  ;;  %v1336_v2 = vld [vmem:[%s1834_s1 + $0x4] sm:$0xf]  ;;  %s304_s13 = sand.u32 1, %s1576_s25  }
  0x20   : > { %v1122_v3 = vor.u32 %v1337_v1, %v1121_v0  ;;  %v1123_v4 = vld [vmem:[%s1834_s1 + $0x8] sm:$0xf0]  ;;  %v1352_v8 = vld [vmem:[#allocation2 + $0x74] sm:$0xf]  ;;  %v1195_v9 = vld [vmem:[#allocation2 + $0x78] sm:$0xf0] }
  0x21   : > { %s1849_s15 = smov (!%p308_p13, %s1101_s15), 15  ;;  %v1126_v5 = vor.u32 %v1336_v2, %v1123_v4  ;;  %v1368_v10 = vld [vmem:[#allocation2 + $0xf4] sm:$0xf]  ;;  %v1198_v11 = vor.u32 %v1352_v8, %v1195_v9  ;;  %v1259_v12 = vld [vmem:[#allocation2 + $0xf8] sm:$0xf0]  ;;  %s1100_s20 = sshll.u32 %s304_s13, 6 }
  0x22   : > { %s1102_s16 = sshll.u32 %s1849_s15, 2  ;;  %381 = vmatpush.bf16.msra.mxu0 %v1122_v3  ;;  %v1350_v13 = vld [vmem:[#allocation2 + $0x64] sm:$0xf]  ;;  %v1187_v14 = vld [vmem:[#allocation2 + $0x68] sm:$0xf0]  ;;  %v1262_v15 = vor.u32 %v1368_v10, %v1259_v12  ;;  %s1789_s21 = scalar_lea.vmem [#allocation7], %s1100_s20 }
  0x23   : > { %s1711_s18 = scalar_lea.vmem %s1833_s0, %s1102_s16  ;;  %410 = vmatpush.bf16.msra.mxu1 %v1126_v5  ;;  %v1366_v16 = vld [vmem:[#allocation2 + $0xe4] sm:$0xf]  ;;  %v1251_v17 = vld [vmem:[#allocation2 + $0xe8] sm:$0xf0]  ;;  %v1190_v18 = vor.u32 %v1350_v13, %v1187_v14  ;;  %v1348_v19 = vld [vmem:[#allocation2 + $0x54] sm:$0xf] }
  0x24   : > { %v1332_v6 = vld [vmem:[%s1711_s18] sm:$0xff]  ;;  %v1333_v7 = vld [vmem:[%s1711_s18 + $0x8] sm:$0xff]  ;;  %v1179_v20 = vld [vmem:[#allocation2 + $0x58] sm:$0xf0]  ;;  %v1254_v21 = vor.u32 %v1366_v16, %v1251_v17  ;;  %s1386_s22 = sshll.u32 %s1655_s28, 6  ;;  %s1005_s9 = sshll.u32 %s1789_s21, 4  ;;  %s1006_s9 = int_to_ptr.vmem [resolvable:$true] %s1005_s9 }
  0x25   : > { %1127 = vmatmul.msk.bf16.vlgmr.msra.gmra.mxu0 %vm361_vm0, %v1332_v6  ;;  %v1364_v22 = vld [vmem:[#allocation2 + $0xd4] sm:$0xf]  ;;  %v1243_v23 = vld [vmem:[#allocation2 + $0xd8] sm:$0xf0]  ;;  %v1193_v24 = vld [vmem:[#allocation2 + $0x70] sm:$0xf]  ;;  %v1182_v31 = vor.u32 %v1348_v19, %v1179_v20  ;;  %s1004_s8 = scalar_lea.hbm %s1840_s7, %s1386_s22 }
  0x26   : > { %1131 = vmatmul.msk.bf16.vlgmr.msra.gmra.mxu1 %vm361_vm0, %v1332_v6  ;;  %712 = vmatpush.bf16.msrb.mxu0 %v1198_v11  ;;  %v1353_v25 = vld [vmem:[#allocation2 + $0x74] sm:$0xf0]  ;;  %v1257_v26 = vld [vmem:[#allocation2 + $0xf0] sm:$0xf]  ;;  %v1185_v30 = vld [vmem:[#allocation2 + $0x60] sm:$0xf]  ;;  %v1246_v35 = vor.u32 %v1364_v22, %v1243_v23 }
  0x27   : > { %741 = vmatpush.bf16.msrb.mxu1 %v1262_v15  ;;  %v1369_v27 = vld [vmem:[#allocation2 + $0xf4] sm:$0xf0]  ;;  %v1194_v28 = vor.u32 %v1353_v25, %v1193_v24  ;;  %v1351_v32 = vld [vmem:[#allocation2 + $0x64] sm:$0xf0]  ;;  %v1249_v33 = vld [vmem:[#allocation2 + $0xe0] sm:$0xf] }
  0x28   : > { %v1258_v29 = vor.u32 %v1369_v27, %v1257_v26  ;;  %v1367_v34 = vld [vmem:[#allocation2 + $0xe4] sm:$0xf0]  ;;  %v1186_v36 = vor.u32 %v1351_v32, %v1185_v30  ;;  %v1346_v37 = vld [vmem:[#allocation2 + $0x44] sm:$0xf]  ;;  %v1171_v38 = vld [vmem:[#allocation2 + $0x48] sm:$0xf0] }
  0x29   : > { %654 = vmatpush.bf16.msra.mxu2 %v1194_v28  ;;  %v1362_v39 = vld [vmem:[#allocation2 + $0xc4] sm:$0xf]  ;;  %v1250_v40 = vor.u32 %v1367_v34, %v1249_v33  ;;  %v1235_v41 = vld [vmem:[#allocation2 + $0xc8] sm:$0xf0]  ;;  %v1177_v42 = vld [vmem:[#allocation2 + $0x50] sm:$0xf]  ;;  %v1174_v47 = vor.u32 %v1346_v37, %v1171_v38 }
  0x2a   : > { %713 = vmatpush.bf16.msrb.mxu0 %v1190_v18  ;;  %683 = vmatpush.bf16.msra.mxu3 %v1258_v29  ;;  %v1349_v43 = vld [vmem:[#allocation2 + $0x54] sm:$0xf0]  ;;  %v1334_v44 = vld [vmem:[%s1711_s18 + $0x10] sm:$0xff]  ;;  %v1238_v48 = vor.u32 %v1362_v39, %v1235_v41  ;;  %v1163_v50 = vld [vmem:[#allocation2 + $0x38] sm:$0xf0]  ;;  %s1007_s14 = sshll.u32 %s1004_s8, 4  ;;  %s1008_s14 = int_to_ptr.hbm [resolvable:$true] %s1007_s14 }
  0x2b   : > { %742 = vmatpush.bf16.msrb.mxu1 %v1254_v21  ;;  %v1241_v45 = vld [vmem:[#allocation2 + $0xd0] sm:$0xf]  ;;  %v1365_v46 = vld [vmem:[#allocation2 + $0xd4] sm:$0xf0]  ;;  %v1344_v49 = vld [vmem:[#allocation2 + $0x34] sm:$0xf]  ;;  %v1178_v51 = vor.u32 %v1349_v43, %v1177_v42 }
  0x2c   : > { %v1360_v52 = vld [vmem:[#allocation2 + $0xb4] sm:$0xf]  ;;  %v1242_v53 = vor.u32 %v1365_v46, %v1241_v45  ;;  %v1227_v54 = vld [vmem:[#allocation2 + $0xb8] sm:$0xf0]  ;;  %v1169_v55 = vld [vmem:[#allocation2 + $0x40] sm:$0xf]  ;;  %v1166_v59 = vor.u32 %v1344_v49, %v1163_v50 }
  0x2d   : > { %655 = vmatpush.bf16.msra.mxu2 %v1186_v36  ;;  %v1347_v56 = vld [vmem:[#allocation2 + $0x44] sm:$0xf0]  ;;  %v1233_v57 = vld [vmem:[#allocation2 + $0xc0] sm:$0xf]  ;;  %v1230_v60 = vor.u32 %v1360_v52, %v1227_v54  ;;  %v1342_v62 = vld [vmem:[#allocation2 + $0x24] sm:$0xf] }
  0x2e   : > { %714 = vmatpush.bf16.msrb.mxu0 %v1182_v31  ;;  %684 = vmatpush.bf16.msra.mxu3 %v1250_v40  ;;  %v1363_v58 = vld [vmem:[#allocation2 + $0xc4] sm:$0xf0]  ;;  %v1170_v61 = vor.u32 %v1347_v56, %v1169_v55  ;;  %v1155_v63 = vld [vmem:[#allocation2 + $0x28] sm:$0xf0]  ;;  %v1335_v2 = vld [vmem:[%s1711_s18 + $0x18] sm:$0xff]  ;;  %s993_s15 = scalar_lea.sflag [#allocation4], %s304_s13 }
  0x2f   : > { %743 = vmatpush.bf16.msrb.mxu1 %v1246_v35  ;;  %v1234_v0 = vor.u32 %v1363_v58, %v1233_v57  ;;  %v1158_v1 = vor.u32 %v1342_v62, %v1155_v63  ;;  %v1161_v3 = vld [vmem:[#allocation2 + $0x30] sm:$0xf]  ;;  %v1345_v4 = vld [vmem:[#allocation2 + $0x34] sm:$0xf0]  ;;  %v1358_v9 = vld [vmem:[#allocation2 + $0xa4] sm:$0xf] }
  0x30   : > { %v1225_v5 = vld [vmem:[#allocation2 + $0xb0] sm:$0xf]  ;;  %v1162_v6 = vor.u32 %v1345_v4, %v1161_v3  ;;  %v1219_v10 = vld [vmem:[#allocation2 + $0xa8] sm:$0xf0]  ;;  %v1153_v12 = vld [vmem:[#allocation2 + $0x20] sm:$0xf] }
  0x31   : > { %656 = vmatpush.bf16.msra.mxu2 %v1178_v51  ;;  %v1222_v11 = vor.u32 %v1358_v9, %v1219_v10  ;;  %v1343_v13 = vld [vmem:[#allocation2 + $0x24] sm:$0xf0]  ;;  %v1217_v14 = vld [vmem:[#allocation2 + $0xa0] sm:$0xf]  ;;  %v1340_v17 = vld [vmem:[#allocation2 + $0x14] sm:$0xf] }
  0x32   : > { %715 = vmatpush.bf16.msrb.mxu0 %v1174_v47  ;;  %685 = vmatpush.bf16.msra.mxu3 %v1242_v53  ;;  %v1154_v15 = vor.u32 %v1343_v13, %v1153_v12  ;;  %v1359_v16 = vld [vmem:[#allocation2 + $0xa4] sm:$0xf0]  ;;  %v1147_v18 = vld [vmem:[#allocation2 + $0x18] sm:$0xf0]  ;;  %v1145_v21 = vld [vmem:[#allocation2 + $0x10] sm:$0xf] }
  0x33   : > { %744 = vmatpush.bf16.msrb.mxu1 %v1238_v48  ;;  %v1218_v19 = vor.u32 %v1359_v16, %v1217_v14  ;;  %v1150_v20 = vor.u32 %v1340_v17, %v1147_v18  ;;  %v1341_v22 = vld [vmem:[#allocation2 + $0x14] sm:$0xf0]  ;;  %v1209_v23 = vld [vmem:[#allocation2 + $0x90] sm:$0xf]  ;;  %v1356_v26 = vld [vmem:[#allocation2 + $0x94] sm:$0xf] }
  0x34   : > { %v1146_v24 = vor.u32 %v1341_v22, %v1145_v21  ;;  %v1357_v25 = vld [vmem:[#allocation2 + $0x94] sm:$0xf0]  ;;  %v1211_v27 = vld [vmem:[#allocation2 + $0x98] sm:$0xf0]  ;;  %v1137_v30 = vld [vmem:[#allocation2] sm:$0xf] }
  0x35   : > { %1128 = vmatmul.msk.bf16.gmra.mxu0 %vm361_vm0, %v1333_v7  ;;  %657 = vmatpush.bf16.msra.mxu2 %v1170_v61  ;;  %v1210_v28 = vor.u32 %v1357_v25, %v1209_v23  ;;  %v1214_v29 = vor.u32 %v1356_v26, %v1211_v27  ;;  %v1339_v31 = vld [vmem:[#allocation2 + $0x4] sm:$0xf0]  ;;  %v1201_v32 = vld [vmem:[#allocation2 + $0x80] sm:$0xf]  ;;  %v1338_v35 = vld [vmem:[#allocation2 + $0x4] sm:$0xf] }
  0x36   : > { %1132 = vmatmul.msk.bf16.gmra.mxu1 %vm361_vm0, %v1333_v7  ;;  %716 = vmatpush.bf16.msrb.mxu0 %v1166_v59  ;;  %v1361_v7 = vld [vmem:[#allocation2 + $0xb4] sm:$0xf0]  ;;  %v1138_v33 = vor.u32 %v1339_v31, %v1137_v30  ;;  %v1355_v34 = vld [vmem:[#allocation2 + $0x84] sm:$0xf0]  ;;  %v1139_v36 = vld [vmem:[#allocation2 + $0x8] sm:$0xf0] }
  0x37   : > { %745 = vmatpush.bf16.msrb.mxu1 %v1230_v60  ;;  %686 = vmatpush.bf16.msra.mxu3 %v1234_v0  ;;  %v1226_v8 = vor.u32 %v1361_v7, %v1225_v5  ;;  %v1202_v37 = vor.u32 %v1355_v34, %v1201_v32  ;;  %v1142_v38 = vor.u32 %v1338_v35, %v1139_v36  ;;  %v1354_v39 = vld [vmem:[#allocation2 + $0x84] sm:$0xf]  ;;  %v1203_v40 = vld [vmem:[#allocation2 + $0x88] sm:$0xf0]  ;;  %v325_v42 = vld [vmem:[%s1835_s2] sm:$0x3] }
  0x38   : > { %v1206_v41 = vor.u32 %v1354_v39, %v1203_v40  ;;  %v1740_v45 = vperm.slane %v325_v42, 0  ;;  %v1742_v46 = vperm.slane %v325_v42, 1  ;;  %v1377_v10 = vld [vmem:[#allocation5 + $0x38] sm:$0xff]  ;;  %v1376_v13 = vld [vmem:[#allocation5 + $0x30] sm:$0xff]  ;;  %v1383_v16 = vld [vmem:[#allocation5 + $0x68] sm:$0xff]  ;;  %s1528_s16 = sshra.s32 %s1008_s14, 4  ;;  %s1529_s16 = int_to_ptr.hbm [resolvable:$true] %s1528_s16 }
  0x39   : > { %658 = vmatpush.bf16.msra.mxu2 %v1162_v6  ;;  %v1384_v14 = vld [vmem:[#allocation5 + $0x70] sm:$0xff]  ;;  %v1374_v23 = vld [vmem:[#allocation5 + $0x20] sm:$0xff]  ;;  %v1373_v31 = vld [vmem:[#allocation5 + $0x18] sm:$0xff]  ;;  %s1530_s28 = scalar_lea.hbm %s1529_s16, 64  ;;  %s1534_s19 = scalar_lea.hbm %s1840_s7, 128 }
  0x3a   : > { %717 = vmatpush.bf16.msrb.mxu0 %v1158_v1  ;;  %v1381_v32 = vld [vmem:[#allocation5 + $0x58] sm:$0xff]  ;;  %v1372_v35 = vld [vmem:[#allocation5 + $0x10] sm:$0xff]  ;;  %p1531_p0 = scmp.ne.s32.totalorder %s1529_s16, %s1530_s28  ;;  %p1535_p3 = scmp.lt.s32.totalorder %s1529_s16, %s1840_s7 }
  0x3b   : > { %687 = vmatpush.bf16.msra.mxu3 %v1226_v8  ;;  %746 = vmatpush.bf16.msrb.mxu1 %v1222_v11  ;;  %v1385_v11 = vld [vmem:[#allocation5 + $0x78] sm:$0xff]  ;;  %p1536_p4 = scmp.lt.s32.totalorder %s1534_s19, %s1530_s28 }
  0x3c   : > { %p1532_p1 = pnand %p1531_p0, %p1672_p5 }
  0x3d   : > { %659 = vmatpush.bf16.msra.mxu2 %v1154_v15  ;;  %v1375_v15 = vld [vmem:[#allocation5 + $0x28] sm:$0xff]  ;;  %p1537_p7 = por %p1536_p4, %p1535_p3 }
  0x3e   : > { %718 = vmatpush.bf16.msrb.mxu0 %v1150_v20  ;;  %p1533_p2 = pneg %p1532_p1 }
  0x3f   : > { %688 = vmatpush.bf16.msra.mxu3 %v1218_v19  ;;  %747 = vmatpush.bf16.msrb.mxu1 %v1214_v29 }
  0x40   : > { %p1538_p8 = pnand %p1537_p7, %p1533_p2 }
  0x41   : > { %660 = vmatpush.bf16.msra.mxu2 %v1146_v24  ;;  %v1382_v24 = vld [vmem:[#allocation5 + $0x60] sm:$0xff] }
  0x42   : > { %719 = vmatpush.bf16.msrb.mxu0 %v1142_v38 }
  0x43   : > { %689 = vmatpush.bf16.msra.mxu3 %v1210_v28  ;;  %748 = vmatpush.bf16.msrb.mxu1 %v1206_v41 }
  0x45   : > { %1129 = vmatmul.msk.bf16.gmra.mxu0 %vm361_vm0, %v1334_v44  ;;  %661 = vmatpush.bf16.msra.mxu2 %v1138_v33 }
  0x46   : > { %1133 = vmatmul.msk.bf16.gmra.mxu1 %vm361_vm0, %v1334_v44 }
  0x47   : > { %690 = vmatpush.bf16.msra.mxu3 %v1202_v37 }
  0x49   : > { %926 = vmatpush.bf16.msrb.mxu2 %v1377_v10 }
  0x4b   : > { %955 = vmatpush.bf16.msrb.mxu3 %v1385_v11 }
  0x4d   : > { %927 = vmatpush.bf16.msrb.mxu2 %v1376_v13 }
  0x4f   : > { %956 = vmatpush.bf16.msrb.mxu3 %v1384_v14 }
  0x51   : > { %928 = vmatpush.bf16.msrb.mxu2 %v1375_v15 }
  0x53   : > { %957 = vmatpush.bf16.msrb.mxu3 %v1383_v16 }
  0x55   : > { %1130 = vmatmul.msk.bf16.gmra.mxu0 %vm361_vm0, %v1335_v2  ;;  %929 = vmatpush.bf16.msrb.mxu2 %v1374_v23 }
  0x56   : > { %1134 = vmatmul.msk.bf16.gmra.mxu1 %vm361_vm0, %v1335_v2 }
  0x57   : > { %958 = vmatpush.bf16.msrb.mxu3 %v1382_v24 }
  0x59   : > { %930 = vmatpush.bf16.msrb.mxu2 %v1373_v31 }
  0x5b   : > { %959 = vmatpush.bf16.msrb.mxu3 %v1381_v32 }
  0x5d   : > { %931 = vmatpush.bf16.msrb.mxu2 %v1372_v35 }
  0xa2   : > { %v383_v43 = vpop.f32.mrf.mxu0 }
  0xa3   : > { %v412_v44 = vpop.f32.mrf.mxu1  ;;  %v384_v47 = vadd.f32 %v383_v43, %v1740_v45 }
  0xa4   : > { %v413_v48 = vadd.f32 %v412_v44, %v1742_v46 }
  0xa5   : > { %v432_v53 = vmax.f32 %v384_v47, 0.0 }
  0xa6   : > { %v433_v55 = vmax.f32 %v413_v48, 0.0 }
  0xaa   : > { %v385_v49 = vpop.f32.mrf.mxu0 }
  0xab   : > { %v386_v50 = vadd.f32 %v385_v49, %v1740_v45  ;;  %v414_v51 = vpop.f32.mrf.mxu1 }
  0xac   : > { %v415_v52 = vadd.f32 %v414_v51, %v1742_v46  ;;  %v1379_v51 = vld [vmem:[#allocation5 + $0x48] sm:$0xff] }
  0xad   : > { %v434_v54 = vmax.f32 %v386_v50, 0.0  ;;  %v1380_v50 = vld [vmem:[#allocation5 + $0x50] sm:$0xff] }
  0xae   : > { %v435_v56 = vmax.f32 %v415_v52, 0.0  ;;  %960 = vmatpush.bf16.msrb.mxu3 %v1380_v50  ;;  %v1371_v52 = vld [vmem:[#allocation5 + $0x8] sm:$0xff] }
  0xaf   : > { %v448_v57 = vpack.c.bf16 %v434_v54, %v432_v53  ;;  %932 = vmatpush.bf16.msrb.mxu2 %v1371_v52  ;;  %v1370_v53 = vld [vmem:[#allocation5] sm:$0xff] }
  0xb0   : > { %v449_v58 = vpack.c.bf16 %v435_v56, %v433_v55 }
  0xb1   : > { %662 = vmatmul.bf16.vlgmr.msra.gmra.mxu2 %v448_v57  ;;  %720 = vmatmul.bf16.vlgmr.msrb.gmra.mxu0 %v448_v57 }
  0xb2   : > { %691 = vmatmul.bf16.vlgmr.msra.gmra.mxu3 %v449_v58  ;;  %749 = vmatmul.bf16.vlgmr.msrb.gmra.mxu1 %v449_v58  ;;  %v388_v59 = vpop.f32.mrf.mxu0 }
  0xb3   : > { %v417_v60 = vpop.f32.mrf.mxu1  ;;  %v389_v61 = vadd.f32 %v388_v59, %v1740_v45  ;;  %961 = vmatpush.bf16.msrb.mxu3 %v1379_v51  ;;  %933 = vmatpush.bf16.msrb.mxu2 %v1370_v53 }
  0xb4   : > { %v418_v62 = vadd.f32 %v417_v60, %v1742_v46 }
  0xb5   : > { %v436_v3 = vmax.f32 %v389_v61, 0.0 }
  0xb6   : > { %v437_v5 = vmax.f32 %v418_v62, 0.0 }
  0xba   : > { %v390_v63 = vpop.f32.mrf.mxu0 }
  0xbb   : > { %v391_v0 = vadd.f32 %v390_v63, %v1740_v45  ;;  %v419_v1 = vpop.f32.mrf.mxu1 }
  0xbc   : > { %v420_v2 = vadd.f32 %v419_v1, %v1742_v46 }
  0xbd   : > { %v438_v4 = vmax.f32 %v391_v0, 0.0 }
  0xbe   : > { %v439_v6 = vmax.f32 %v420_v2, 0.0 }
  0xbf   : > { %v450_v7 = vpack.c.bf16 %v438_v4, %v436_v3 }
  0xc0   : > { %v451_v8 = vpack.c.bf16 %v439_v6, %v437_v5 }
  0xc1   : > { %667 = vmatmul.bf16.gmra.mxu2 %v450_v7  ;;  %725 = vmatmul.bf16.gmra.mxu0 %v450_v7 }
  0xc2   : > { %696 = vmatmul.bf16.gmra.mxu3 %v451_v8  ;;  %754 = vmatmul.bf16.gmra.mxu1 %v451_v8  ;;  %v393_v9 = vpop.f32.mrf.mxu0 }
  0xc3   : > { %v422_v12 = vpop.f32.mrf.mxu1  ;;  %v394_v17 = vadd.f32 %v393_v9, %v1740_v45 }
  0xc4   : > { %v423_v18 = vadd.f32 %v422_v12, %v1742_v46 }
  0xc5   : > { %v440_v25 = vmax.f32 %v394_v17, 0.0 }
  0xc6   : > { %v441_v27 = vmax.f32 %v423_v18, 0.0 }
  0xca   : > { %v395_v19 = vpop.f32.mrf.mxu0 }
  0xcb   : > { %v396_v20 = vadd.f32 %v395_v19, %v1740_v45  ;;  %v424_v21 = vpop.f32.mrf.mxu1 }
  0xcc   : > { %v425_v22 = vadd.f32 %v424_v21, %v1742_v46 }
  0xcd   : > { %v442_v26 = vmax.f32 %v396_v20, 0.0 }
  0xce   : > { %v443_v28 = vmax.f32 %v425_v22, 0.0 }
  0xcf   : > { %v452_v29 = vpack.c.bf16 %v442_v26, %v440_v25 }
  0xd0   : > { %v453_v30 = vpack.c.bf16 %v443_v28, %v441_v27 }
  0xd1   : > { %672 = vmatmul.bf16.gmra.mxu2 %v452_v29  ;;  %730 = vmatmul.bf16.gmra.mxu0 %v452_v29 }
  0xd2   : > { %701 = vmatmul.bf16.gmra.mxu3 %v453_v30  ;;  %759 = vmatmul.bf16.gmra.mxu1 %v453_v30  ;;  %v398_v33 = vpop.f32.mrf.mxu0 }
  0xd3   : > { %v427_v34 = vpop.f32.mrf.mxu1  ;;  %v399_v36 = vadd.f32 %v398_v33, %v1740_v45 }
  0xd4   : > { %v428_v37 = vadd.f32 %v427_v34, %v1742_v46 }
  0xd5   : > { %v444_v42 = vmax.f32 %v399_v36, 0.0 }
  0xd6   : > { %v445_v44 = vmax.f32 %v428_v37, 0.0 }
  0xda   : > { %v400_v38 = vpop.f32.mrf.mxu0 }
  0xdb   : > { %v401_v39 = vadd.f32 %v400_v38, %v1740_v45  ;;  %v429_v40 = vpop.f32.mrf.mxu1  ;;  %v1378_v45 = vld [vmem:[#allocation5 + $0x40] sm:$0xff] }
  0xdc   : > { %v430_v41 = vadd.f32 %v429_v40, %v1742_v46  ;;  %962 = vmatpush.bf16.msrb.mxu3 %v1378_v45  ;;  %v488_v46 = vld [vmem:[%s1837_s4] sm:$0x3] }
  0xdd   : > { %v446_v43 = vmax.f32 %v401_v39, 0.0  ;;  %v1763_v55 = vperm.slane %v488_v46, 1  ;;  %v1766_v59 = vperm.slane %v488_v46, 0 }
  0xde   : > { %v447_v47 = vmax.f32 %v430_v41, 0.0 }
  0xdf   : > { %v454_v48 = vpack.c.bf16 %v446_v43, %v444_v42 }
  0xe0   : > { %v455_v49 = vpack.c.bf16 %v447_v47, %v445_v44 }
  0xe1   : > { %677 = vmatmul.bf16.gmra.mxu2 %v454_v48  ;;  %735 = vmatmul.bf16.gmra.mxu0 %v454_v48 }
  0xe2   : > { %706 = vmatmul.bf16.gmra.mxu3 %v455_v49  ;;  %764 = vmatmul.bf16.gmra.mxu1 %v455_v49 }
 0x12e   : > { %v721_v54 = vpop.f32.mrf.mxu0 }
 0x12f   : > { %v750_v56 = vpop.f32.mrf.mxu1  ;;  %v722_v57 = vadd.f32 %v721_v54, %v1763_v55 }
 0x131   : > { %v751_v62 = vadd.f32 %v750_v56, %v722_v57 }
 0x133   : > { %v771_v3 = vmax.f32 %v751_v62, 0.0 }
 0x134   : > { %v663_v58 = vpop.f32.mrf.mxu2 }
 0x135   : > { %v692_v60 = vpop.f32.mrf.mxu3  ;;  %v664_v1 = vadd.f32 %v663_v58, %v1766_v59 }
 0x136   : > { %v723_v61 = vpop.f32.mrf.mxu0 }
 0x137   : > { %v724_v63 = vadd.f32 %v723_v61, %v1763_v55  ;;  %v752_v0 = vpop.f32.mrf.mxu1  ;;  %v693_v6 = vadd.f32 %v692_v60, %v664_v1 }
 0x139   : > { %v753_v2 = vadd.f32 %v752_v0, %v724_v63  ;;  %v770_v13 = vmax.f32 %v693_v6, 0.0 }
 0x13b   : > { %v773_v4 = vmax.f32 %v753_v2, 0.0 }
 0x13c   : > { %v665_v5 = vpop.f32.mrf.mxu2 }
 0x13d   : > { %v787_v7 = vpack.c.bf16 %v773_v4, %v771_v3  ;;  %v666_v8 = vadd.f32 %v665_v5, %v1766_v59  ;;  %v694_v9 = vpop.f32.mrf.mxu3 }
 0x13e   : > { %v726_v10 = vpop.f32.mrf.mxu0 }
 0x13f   : > { %v695_v11 = vadd.f32 %v694_v9, %v666_v8  ;;  %v755_v12 = vpop.f32.mrf.mxu1  ;;  %963 = vmatmul.bf16.vlgmr.msrb.gmra.mxu3 %v787_v7  ;;  %v727_v16 = vadd.f32 %v726_v10, %v1763_v55 }
 0x141   : > { %v772_v14 = vmax.f32 %v695_v11, 0.0  ;;  %v756_v20 = vadd.f32 %v755_v12, %v727_v16 }
 0x143   : > { %v786_v15 = vpack.c.bf16 %v772_v14, %v770_v13  ;;  %v775_v25 = vmax.f32 %v756_v20, 0.0 }
 0x144   : > { %v668_v17 = vpop.f32.mrf.mxu2 }
 0x145   : > { %v697_v18 = vpop.f32.mrf.mxu3  ;;  %934 = vmatmul.bf16.vlgmr.msrb.gmra.mxu2 %v786_v15  ;;  %v669_v23 = vadd.f32 %v668_v17, %v1766_v59 }
 0x146   : > { %v728_v19 = vpop.f32.mrf.mxu0 }
 0x147   : > { %v729_v21 = vadd.f32 %v728_v19, %v1763_v55  ;;  %v757_v22 = vpop.f32.mrf.mxu1  ;;  %v698_v28 = vadd.f32 %v697_v18, %v669_v23  ;;  %v1453_v18 = vld [vmem:[%s1839_s6] ss:$0 sm:$0xff] }
 0x149   : > { %v758_v24 = vadd.f32 %v757_v22, %v729_v21  ;;  %v774_v35 = vmax.f32 %v698_v28, 0.0 }
 0x14b   : > { %v777_v26 = vmax.f32 %v758_v24, 0.0 }
 0x14c   : > { %v670_v27 = vpop.f32.mrf.mxu2 }
 0x14d   : > { %v671_v29 = vadd.f32 %v670_v27, %v1766_v59  ;;  %v699_v30 = vpop.f32.mrf.mxu3  ;;  %v789_v31 = vpack.c.bf16 %v777_v26, %v775_v25 }
 0x14e   : > { %v731_v32 = vpop.f32.mrf.mxu0 }
 0x14f   : > { %v700_v33 = vadd.f32 %v699_v30, %v671_v29  ;;  %v760_v34 = vpop.f32.mrf.mxu1  ;;  %968 = vmatmul.bf16.gmra.mxu3 %v789_v31  ;;  %v732_v37 = vadd.f32 %v731_v32, %v1763_v55 }
 0x151   : > { %v776_v36 = vmax.f32 %v700_v33, 0.0  ;;  %v761_v42 = vadd.f32 %v760_v34, %v732_v37 }
 0x153   : > { %v788_v38 = vpack.c.bf16 %v776_v36, %v774_v35  ;;  %v779_v49 = vmax.f32 %v761_v42, 0.0 }
 0x154   : > { %v673_v39 = vpop.f32.mrf.mxu2 }
 0x155   : > { %v702_v40 = vpop.f32.mrf.mxu3  ;;  %939 = vmatmul.bf16.gmra.mxu2 %v788_v38  ;;  %v674_v47 = vadd.f32 %v673_v39, %v1766_v59 }
 0x156   : > { %v733_v41 = vpop.f32.mrf.mxu0 }
 0x157   : > { %v734_v43 = vadd.f32 %v733_v41, %v1763_v55  ;;  %v762_v44 = vpop.f32.mrf.mxu1  ;;  %v703_v52 = vadd.f32 %v702_v40, %v674_v47 }
 0x159   : > { %v763_v48 = vadd.f32 %v762_v44, %v734_v43  ;;  %v778_v58 = vmax.f32 %v703_v52, 0.0 }
 0x15b   : > { %v781_v50 = vmax.f32 %v763_v48, 0.0 }
 0x15c   : > { %v675_v51 = vpop.f32.mrf.mxu2 }
 0x15d   : > { %v676_v45 = vadd.f32 %v675_v51, %v1766_v59  ;;  %v704_v53 = vpop.f32.mrf.mxu3  ;;  %v791_v46 = vpack.c.bf16 %v781_v50, %v779_v49 }
 0x15e   : > { %v736_v54 = vpop.f32.mrf.mxu0 }
 0x15f   : > { %v705_v56 = vadd.f32 %v704_v53, %v676_v45  ;;  %v765_v57 = vpop.f32.mrf.mxu1  ;;  %973 = vmatmul.bf16.gmra.mxu3 %v791_v46  ;;  %v737_v61 = vadd.f32 %v736_v54, %v1763_v55 }
 0x161   : > { %v780_v60 = vmax.f32 %v705_v56, 0.0  ;;  %v766_v2 = vadd.f32 %v765_v57, %v737_v61 }
 0x163   : > { %v790_v62 = vpack.c.bf16 %v780_v60, %v778_v58  ;;  %v783_v7 = vmax.f32 %v766_v2, 0.0 }
 0x164   : > { %v678_v63 = vpop.f32.mrf.mxu2 }
 0x165   : > { %v707_v0 = vpop.f32.mrf.mxu3  ;;  %944 = vmatmul.bf16.gmra.mxu2 %v790_v62  ;;  %v679_v5 = vadd.f32 %v678_v63, %v1766_v59 }
 0x166   : > { %v738_v1 = vpop.f32.mrf.mxu0 }
 0x167   : > { %v739_v3 = vadd.f32 %v738_v1, %v1763_v55  ;;  %v767_v4 = vpop.f32.mrf.mxu1  ;;  %v708_v10 = vadd.f32 %v707_v0, %v679_v5 }
 0x169   : > { %v768_v6 = vadd.f32 %v767_v4, %v739_v3  ;;  %v782_v15 = vmax.f32 %v708_v10, 0.0 }
 0x16b   : > { %v785_v8 = vmax.f32 %v768_v6, 0.0 }
 0x16c   : > { %v680_v9 = vpop.f32.mrf.mxu2 }
 0x16d   : > { %v681_v11 = vadd.f32 %v680_v9, %v1766_v59  ;;  %v793_v12 = vpack.c.bf16 %v785_v8, %v783_v7  ;;  %v709_v13 = vpop.f32.mrf.mxu3 }
 0x16f   : > { %v710_v14 = vadd.f32 %v709_v13, %v681_v11  ;;  %978 = vmatmul.bf16.gmra.mxu3 %v793_v12 }
 0x171   : > { %v784_v16 = vmax.f32 %v710_v14, 0.0 }
 0x173   : > { %v792_v17 = vpack.c.bf16 %v784_v16, %v782_v15 }
 0x175   : > { %949 = vmatmul.bf16.gmra.mxu2 %v792_v17 }
 0x1c2   : > { %v964_v55 = vpop.f32.mrf.mxu3 }
 0x1c8   : > { %v935_v19 = vpop.f32.mrf.mxu2 }
 0x1c9   : > { %v936_v20 = vadd.f32 %v1453_v18, %v935_v19 }
 0x1ca   : > { %v966_v21 = vpop.f32.mrf.mxu3 }
 0x1cb   : > { %v965_v59 = vadd.f32 %v964_v55, %v936_v20 }
 0x1cd   : > { %984 = vst [vmem:[%s1789_s21] sm:$0xff] %v965_v59 }
 0x1d0   : > { %v937_v22 = vpop.f32.mrf.mxu2 }
 0x1d1   : > { %v938_v23 = vadd.f32 %v1453_v18, %v937_v22 }
 0x1d2   : > { %v969_v24 = vpop.f32.mrf.mxu3 }
 0x1d3   : > { %v967_v25 = vadd.f32 %v966_v21, %v938_v23 }
 0x1d5   : > { %985 = vst [vmem:[%s1789_s21 + $0x8] sm:$0xff] %v967_v25 }
 0x1d8   : > { %v940_v26 = vpop.f32.mrf.mxu2 }
 0x1d9   : > { %v941_v27 = vadd.f32 %v1453_v18, %v940_v26 }
 0x1da   : > { %v971_v28 = vpop.f32.mrf.mxu3 }
 0x1db   : > { %v970_v29 = vadd.f32 %v969_v24, %v941_v27 }
 0x1dd   : > { %986 = vst [vmem:[%s1789_s21 + $0x10] sm:$0xff] %v970_v29 }
 0x1e0   : > { %v942_v30 = vpop.f32.mrf.mxu2 }
 0x1e1   : > { %v943_v31 = vadd.f32 %v1453_v18, %v942_v30 }
 0x1e2   : > { %v974_v33 = vpop.f32.mrf.mxu3 }
 0x1e3   : > { %v972_v32 = vadd.f32 %v971_v28, %v943_v31 }
 0x1e5   : > { %987 = vst [vmem:[%s1789_s21 + $0x18] sm:$0xff] %v972_v32 }
 0x1e8   : > { %v945_v34 = vpop.f32.mrf.mxu2 }
 0x1e9   : > { %v946_v35 = vadd.f32 %v1453_v18, %v945_v34 }
 0x1ea   : > { %v976_v37 = vpop.f32.mrf.mxu3 }
 0x1eb   : > { %v975_v36 = vadd.f32 %v974_v33, %v946_v35 }
 0x1ed   : > { %988 = vst [vmem:[%s1789_s21 + $0x20] sm:$0xff] %v975_v36 }
 0x1f0   : > { %v947_v38 = vpop.f32.mrf.mxu2 }
 0x1f1   : > { %v948_v39 = vadd.f32 %v1453_v18, %v947_v38 }
 0x1f2   : > { %v979_v41 = vpop.f32.mrf.mxu3 }
 0x1f3   : > { %v977_v40 = vadd.f32 %v976_v37, %v948_v39 }
 0x1f5   : > { %989 = vst [vmem:[%s1789_s21 + $0x28] sm:$0xff] %v977_v40 }
 0x1f8   : > { %v950_v42 = vpop.f32.mrf.mxu2 }
 0x1f9   : > { %v951_v43 = vadd.f32 %v1453_v18, %v950_v42 }
 0x1fa   : > { %v981_v49 = vpop.f32.mrf.mxu3 }
 0x1fb   : > { %v980_v44 = vadd.f32 %v979_v41, %v951_v43 }
 0x1fd   : > { %990 = vst [vmem:[%s1789_s21 + $0x30] sm:$0xff] %v980_v44 }
 0x200   : > { %v952_v47 = vpop.f32.mrf.mxu2 }
 0x201   : > { %v953_v48 = vadd.f32 %v1453_v18, %v952_v47 }
 0x203   : > { %v982_v50 = vadd.f32 %v981_v49, %v953_v48 }
 0x205   : > { %991 = vst [vmem:[%s1789_s21 + $0x38] sm:$0xff] %v982_v50 }
 0x206   : > { %1541 = shalt.err (!%p1538_p8)
}
 0x207   : > { %s1592_s13 = smov 128   ;;  %s1593_s21 = smov 8  }
 0x208   : > { %1395 = dma.vmem_to_hbm [thread:$0]  (%p1672_p5), %s1006_s9, 1024, %s1008_s14, %s993_s15, %s1592_s13, %s1592_s13, %s1593_s21  }
 0x209 PF: > { %p1412_p9 = scmp.ge.s32.totalorder %s1584_s27, 2  ;;  %s1022_s23 = sand.u32 1, %s1572_s24  }
 0x20a   : > { %s1023_s29 = scalar_lea.sflag [#allocation4], %s1022_s23 }
 0x20b   : > { %p1405_p10 = pnand %p1412_p9, %p1676_p6 }
 0x20d   : > { %p1406_p11 = pneg %p1405_p10 }
 0x20f   : > { %1567 = dma.done.wait (%p1406_p11), %s1023_s29, 1024  }
 0x210   : > { %1569 = vsyncadd (%p1406_p11), %s1023_s29, 4294966272  ;;  %p19_p12 = scmp.ge.s32.totalorder %s1659_s30, 4   ;;  %s1844_s24 = smov %s1576_s25 }
 0x211   : > { %s1845_s25 = smov %s1580_s26  ;;  %s1846_s26 = smov %s1670_s10 }
 0x212   : > { %s1847_s27 = smov %s1659_s30  ;;  %21 = sbr.rel (!%p19_p12) target bundleno = 5 (0x5), region = 92 }
 0x217   :  { %1029 = vsyncpa [#allocation3], 1 }
 0x218   :  { %1031 = vsyncpa [#allocation3 + $0x1], 1 }
 0x219   :  { %1032 = vsyncpa [#allocation6], 1 }
 0x21a   :  { %1033 = vsyncpa [#allocation4], 1 }
 0x21b   :  { %1035 = vsyncpa [#allocation4 + $0x1], 1 }

</bundles_post_ra>
